<compile_context>
chip_gen: v5e
topology: v5e:2x2
jax: 0.10.0
libtpu: 0.0.40
codegen_flags: <defaults>
</compile_context>

<pallas_src>
import functools

import jax
import jax.numpy as jnp
from jax.experimental import pallas as pl
from jax.experimental.pallas import tpu as pltpu


def _round_up(x, m):
    return ((x + m - 1) // m) * m


def _fused_qkv_kernel(x_ref, w_ref, q_ref, k_ref, v_ref, *, qk_out, v_out, qk_pad):
    # One MXU push per batch tile: (tb, in_dim) @ (in_dim, 2*qk_pad + v_pad),
    # f32 accumulation, then three lane-aligned splits written straight from
    # VMEM to the three outputs.
    acc = jnp.dot(x_ref[...], w_ref[...], preferred_element_type=jnp.float32)
    q_ref[...] = acc[:, :qk_out].astype(q_ref.dtype)
    k_ref[...] = acc[:, qk_pad:qk_pad + qk_out].astype(k_ref.dtype)
    v_ref[...] = acc[:, 2 * qk_pad:2 * qk_pad + v_out].astype(v_ref.dtype)


def make_fused_weight(wq, wk, wv, compute_dtype=None, lane_align=128):
    """Parameter-setup step (call once, OUTSIDE the jitted hot path).

    wq/wk: (H*k_dim, in_dim), wv: (H*v_dim, in_dim)  (PyTorch nn.Linear layout).
    Returns (w_fused, qk_pad, v_pad) where w_fused has shape
    (in_dim, 2*qk_pad + v_pad); each column group is zero-padded to a
    128-lane multiple so kernel stores/splits are lane-aligned.
    """
    qk_out, _ = wq.shape
    v_out = wv.shape[0]
    qk_pad = _round_up(qk_out, lane_align)
    v_pad = _round_up(v_out, lane_align)

    def pad_t(w, padded_cols):
        wt = w.T  # (in_dim, out)
        return jnp.pad(wt, ((0, 0), (0, padded_cols - wt.shape[1])))

    w = jnp.concatenate(
        [pad_t(wq, qk_pad), pad_t(wk, qk_pad), pad_t(wv, v_pad)], axis=1)
    if compute_dtype is not None:
        w = w.astype(compute_dtype)
    return w, qk_pad, v_pad


def base_attention_forward(feat, w_fused, qk_out, v_out, qk_pad, v_pad,
                           block_b=2048, out_dtype=None,
                           vmem_budget_bytes=32 * 1024 * 1024):
    """feat: (B, in_dim); w_fused: (in_dim, 2*qk_pad + v_pad), already in the
    desired compute dtype. Returns (q, k, v) with shapes
    (B, 1, qk_out), (B, 1, qk_out), (B, 1, v_out)."""
    B, in_dim = feat.shape
    total_cols = 2 * qk_pad + v_pad
    assert w_fused.shape == (in_dim, total_cols)

    if out_dtype is None:
        out_dtype = feat.dtype
    # Compute dtype is whatever the (pre-cast) weight is stored in.
    if feat.dtype != w_fused.dtype:
        feat = feat.astype(w_fused.dtype)

    in_bytes = jnp.dtype(w_fused.dtype).itemsize
    out_bytes = jnp.dtype(out_dtype).itemsize

    # Sublane packing: 8 rows (f32), 16 (bf16), 32 (int8/fp8).
    sublane = max(8, 32 // max(1, in_bytes))

    # VMEM budget -> batch tile size.
    #   resident weight (count x2 for buffering) + per-row cost of:
    #   double-buffered feat tile, double-buffered q/k/v tiles, f32 accumulator.
    weight_bytes = in_dim * total_cols * in_bytes
    per_row = (2 * in_dim * in_bytes
               + 2 * (2 * qk_out + v_out) * out_bytes
               + total_cols * 4)
    avail = max(vmem_budget_bytes - 2 * weight_bytes, per_row * sublane)
    tb = min(block_b, avail // per_row, _round_up(B, sublane))
    tb = max(sublane, (tb // sublane) * sublane)
    if tb >= 512:
        tb = (tb // 256) * 256   # full MXU cadence on v6e/v7x when tiles are big

    grid_b = pl.cdiv(B, tb)      # edge block masked by Pallas; no host-side pad

    vmem_limit = int(min(2 * weight_bytes + tb * per_row + (4 << 20), 56 << 20))
    vmem_limit = max(vmem_limit, 16 << 20)

    cost = pl.CostEstimate(
        flops=2 * B * in_dim * total_cols,
        transcendentals=0,
        bytes_accessed=(B * in_dim * in_bytes
                        + in_dim * total_cols * in_bytes
                        + B * (2 * qk_out + v_out) * out_bytes),
    )

    kernel = functools.partial(
        _fused_qkv_kernel, qk_out=qk_out, v_out=v_out, qk_pad=qk_pad)

    q2, k2, v2 = pl.pallas_call(
        kernel,
        out_shape=(jax.ShapeDtypeStruct((B, qk_out), out_dtype),
                   jax.ShapeDtypeStruct((B, qk_out), out_dtype),
                   jax.ShapeDtypeStruct((B, v_out), out_dtype)),
        grid_spec=pltpu.PrefetchScalarGridSpec(
            num_scalar_prefetch=0,
            grid=(grid_b,),
            in_specs=[
                # feat: streamed per batch tile (double-buffered by Pallas).
                pl.BlockSpec((tb, in_dim), lambda i: (i, 0)),
                # fused weight: constant index_map -> stays VMEM-resident.
                pl.BlockSpec((in_dim, total_cols), lambda i: (0, 0)),
            ],
            out_specs=[
                pl.BlockSpec((tb, qk_out), lambda i: (i, 0)),
                pl.BlockSpec((tb, qk_out), lambda i: (i, 0)),
                pl.BlockSpec((tb, v_out), lambda i: (i, 0)),
            ],
        ),
        compiler_params=pltpu.CompilerParams(
            dimension_semantics=("parallel",),
            vmem_limit_bytes=vmem_limit,
        ),
        cost_estimate=cost,
    )(feat, w_fused)

    # view(B, 1, -1) equivalents — metadata-only reshapes.
    return (q2.reshape(B, 1, qk_out),
            k2.reshape(B, 1, qk_out),
            v2.reshape(B, 1, v_out))


if __name__ == "__main__":
    # Small, deterministic config consistent with the module's __init__.
    B = 8
    in_dim = 32
    k_dim = 16
    v_dim = 16
    num_heads = 3
    qk_out = num_heads * k_dim   # 48
    v_out = num_heads * v_dim    # 48

    key = jax.random.PRNGKey(0)
    k_feat, k_wq, k_wk, k_wv = jax.random.split(key, 4)

    feat = jax.random.normal(k_feat, (B, in_dim), dtype=jnp.float32)
    # PyTorch nn.Linear weight layout: (out_features, in_features), no bias.
    wq = jax.random.normal(k_wq, (qk_out, in_dim), dtype=jnp.float32) * 0.05
    wk = jax.random.normal(k_wk, (qk_out, in_dim), dtype=jnp.float32) * 0.05
    wv = jax.random.normal(k_wv, (v_out, in_dim), dtype=jnp.float32) * 0.05

    # Plain-JAX reference (same math as the PyTorch module).
    q_ref = (feat @ wq.T).reshape(B, 1, -1)
    k_ref = (feat @ wk.T).reshape(B, 1, -1)
    v_ref = (feat @ wv.T).reshape(B, 1, -1)

    # ---- f32 path (exact semantics match) ------------------------------
    w_fused, qk_pad, v_pad = make_fused_weight(wq, wk, wv)
    fwd_f32 = jax.jit(functools.partial(
        base_attention_forward, qk_out=qk_out, v_out=v_out,
        qk_pad=qk_pad, v_pad=v_pad))
    q, k, v = fwd_f32(feat, w_fused)
    jax.block_until_ready((q, k, v))

    assert q.shape == (B, 1, qk_out)
    assert k.shape == (B, 1, qk_out)
    assert v.shape == (B, 1, v_out)
    assert jnp.allclose(q, q_ref, atol=1e-5)
    assert jnp.allclose(k, k_ref, atol=1e-5)
    assert jnp.allclose(v, v_ref, atol=1e-5)

    # ---- bf16 compute + bf16 output path (HBM-bandwidth win) ------------
    w_bf16, qk_pad_b, v_pad_b = make_fused_weight(
        wq, wk, wv, compute_dtype=jnp.bfloat16)
    fwd_bf16 = jax.jit(functools.partial(
        base_attention_forward, qk_out=qk_out, v_out=v_out,
        qk_pad=qk_pad_b, v_pad=v_pad_b, out_dtype=jnp.bfloat16))
    qb, kb, vb = fwd_bf16(feat, w_bf16)
    jax.block_until_ready((qb, kb, vb))

    assert jnp.allclose(qb.astype(jnp.float32), q_ref, atol=3e-2)
    assert jnp.allclose(kb.astype(jnp.float32), k_ref, atol=3e-2)
    assert jnp.allclose(vb.astype(jnp.float32), v_ref, atol=3e-2)

    print("KERNEL_OK")
</pallas_src>

<mosaic_0001>
module attributes {stable_mosaic.version = 11 : i64} {
  func.func @_fused_qkv_kernel(%arg0: i32, %arg1: memref<8x32xf32, #tpu.memory_space<vmem>>, %arg2: memref<32x384xf32, #tpu.memory_space<vmem>>, %arg3: memref<8x48xf32, #tpu.memory_space<vmem>>, %arg4: memref<8x48xf32, #tpu.memory_space<vmem>>, %arg5: memref<8x48xf32, #tpu.memory_space<vmem>>) attributes {dimension_semantics = [#tpu.dimension_semantics<parallel>], iteration_bounds = array<i64: 1>, scalar_prefetch = 0 : i64, scratch_operands = 0 : i64, tpu.core_type = #tpu.core_type<tc>, window_params = [{transform_indices = @transform_0, window_bounds = array<i64: 8, 32>}, {pipeline_mode = #tpu.pipeline_mode<synchronous>, transform_indices = @transform_1, window_bounds = array<i64: 32, 384>}, {transform_indices = @transform_2, window_bounds = array<i64: 8, 48>}, {transform_indices = @transform_3, window_bounds = array<i64: 8, 48>}, {transform_indices = @transform_4, window_bounds = array<i64: 8, 48>}]} {
    %c0 = arith.constant 0 : index
    %c0_0 = arith.constant 0 : index
    %0 = vector.load %arg1[%c0, %c0_0] : memref<8x32xf32, #tpu.memory_space<vmem>>, vector<8x32xf32>
    %c0_1 = arith.constant 0 : index
    %c0_2 = arith.constant 0 : index
    %1 = vector.load %arg2[%c0_1, %c0_2] : memref<32x384xf32, #tpu.memory_space<vmem>>, vector<32x384xf32>
    %cst = arith.constant dense<0.000000e+00> : vector<8x384xf32>
    %2 = tpu.matmul %0, %1, %cst {dimension_numbers = #tpu.dot_dimension_numbers<[1], [0], [0], [1], [0, 0, 1, 1], [], []>} : vector<8x32xf32>, vector<32x384xf32>, vector<8x384xf32> -> vector<8x384xf32>
    %3 = vector.extract_strided_slice %2 {offsets = [0, 0], sizes = [8, 48], strides = [1, 1]} : vector<8x384xf32> to vector<8x48xf32>
    %c0_3 = arith.constant 0 : index
    %c0_4 = arith.constant 0 : index
    %4 = vector.load %arg3[%c0_3, %c0_4] : memref<8x48xf32, #tpu.memory_space<vmem>>, vector<8x48xf32>
    tpu.vector_store %arg3[%c0_3, %c0_4], %3 {strides = array<i32>} : memref<8x48xf32, #tpu.memory_space<vmem>>, vector<8x48xf32>,
    %5 = vector.extract_strided_slice %2 {offsets = [0, 128], sizes = [8, 48], strides = [1, 1]} : vector<8x384xf32> to vector<8x48xf32>
    %c0_5 = arith.constant 0 : index
    %c0_6 = arith.constant 0 : index
    %6 = vector.load %arg4[%c0_5, %c0_6] : memref<8x48xf32, #tpu.memory_space<vmem>>, vector<8x48xf32>
    tpu.vector_store %arg4[%c0_5, %c0_6], %5 {strides = array<i32>} : memref<8x48xf32, #tpu.memory_space<vmem>>, vector<8x48xf32>,
    %7 = vector.extract_strided_slice %2 {offsets = [0, 256], sizes = [8, 48], strides = [1, 1]} : vector<8x384xf32> to vector<8x48xf32>
    %c0_7 = arith.constant 0 : index
    %c0_8 = arith.constant 0 : index
    %8 = vector.load %arg5[%c0_7, %c0_8] : memref<8x48xf32, #tpu.memory_space<vmem>>, vector<8x48xf32>
    tpu.vector_store %arg5[%c0_7, %c0_8], %7 {strides = array<i32>} : memref<8x48xf32, #tpu.memory_space<vmem>>, vector<8x48xf32>,
    return
  }
  func.func @transform_0(%arg0: i32) -> (i32, i32) {
    %c0_i32 = arith.constant 0 : i32
    %c0_i32_0 = arith.constant 0 : i32
    return %arg0, %c0_i32 : i32, i32
  }
  func.func @transform_1(%arg0: i32) -> (i32, i32) {
    %c0_i32 = arith.constant 0 : i32
    %c0_i32_0 = arith.constant 0 : i32
    %c0_i32_1 = arith.constant 0 : i32
    return %c0_i32, %c0_i32_0 : i32, i32
  }
  func.func @transform_2(%arg0: i32) -> (i32, i32) {
    %c0_i32 = arith.constant 0 : i32
    %c0_i32_0 = arith.constant 0 : i32
    return %arg0, %c0_i32 : i32, i32
  }
  func.func @transform_3(%arg0: i32) -> (i32, i32) {
    %c0_i32 = arith.constant 0 : i32
    %c0_i32_0 = arith.constant 0 : i32
    return %arg0, %c0_i32 : i32, i32
  }
  func.func @transform_4(%arg0: i32) -> (i32, i32) {
    %c0_i32 = arith.constant 0 : i32
    %c0_i32_0 = arith.constant 0 : i32
    return %arg0, %c0_i32 : i32, i32
  }
}

</mosaic_0001>

<bundles_post_ra>
// kernel: base_attention_forward.1
= control target key start
LH: loop header
LB: loop body
LE: loop exit
PB: predicated region body
PF: predicated region fallthrough
CT: control target
= control target key end

     0   :  { %10 = vsyncpa [#allocation3], 0  ;;  %s364_s0 = inlined_call_operand.hbm [shape: f32[8,32], index: 0, kind: input, shape index: {}]   ;;  %s365_s1 = inlined_call_operand.hbm [shape: f32[32,384], index: 1, kind: input, shape index: {}]   ;;  %s366_s2 = inlined_call_operand.hbm [shape: f32[8,48], index: 2, kind: output, shape index: {0}]   ;;  %s367_s3 = inlined_call_operand.hbm [shape: f32[8,48], index: 3, kind: output, shape index: {1}]   ;;  %s368_s4 = inlined_call_operand.hbm [shape: f32[8,48], index: 4, kind: output, shape index: {2}]  }
   0x1   :  { %11 = vsyncpa [#allocation6], 0 }
   0x2   :  { %12 = vsyncpa [#allocation4], 0 }
   0x3   :  { %13 = vsyncpa [#allocation9], 0  ;;  %s19_s17 = sshll.u32 %s364_s0, 4  ;;  %s314_s18 = smov [#allocation2]   ;;  %s20_s17 = int_to_ptr.hbm [resolvable:$true] %s19_s17 }
   0x4   :  { %s21_s19 = sshll.u32 %s314_s18, 4  ;;  %s29_s22 = sshll.u32 %s365_s1, 4  ;;  %s22_s19 = int_to_ptr.vmem [resolvable:$true] %s21_s19  ;;  %s30_s22 = int_to_ptr.hbm [resolvable:$true] %s29_s22 }
   0x5   :  { %24 = dma.hbm_to_vmem [thread:$0]  %s20_s17, 128, %s22_s19, [#allocation3]  }
   0x6   :  { %s315_s23 = smov [#allocation5]   ;;  %s316_s25 = smov 384  }
   0x7   :  { %s31_s24 = sshll.u32 %s315_s23, 4  ;;  %s317_s26 = smov 24   ;;  %s32_s24 = int_to_ptr.vmem [resolvable:$true] %s31_s24 }
   0x8   :  { %37 = dma.hbm_to_vmem [thread:$0]  %s30_s22, 1536, %s32_s24, [#allocation6], %s316_s25, %s316_s25, %s317_s26  }
   0x9   :  { %306 = dma.done.wait [#allocation3], 128  }
   0xa   :  { %307 = vsyncadd [#allocation3], 4294967168 }
   0xb   :  { %308 = dma.done.wait [#allocation6], 1536  }
   0xc   :  { %309 = vsyncadd [#allocation6], 4294965760  ;;  %v58_v0 = vld [vmem:[#allocation5 + $0x58] sm:$0xff]  ;;  %v55_v1 = vld [vmem:[#allocation5 + $0x40] sm:$0xff]  ;;  %vm59_vm0 = vcmask 261120   ;;  %s318_s0 = smov [#allocation8]  }
   0xd   :  { %115 = vmatpush.msra.mxu2 %v58_v0  ;;  %v57_v2 = vld [vmem:[#allocation5 + $0x50] sm:$0xff]  ;;  %v56_v3 = vld [vmem:[#allocation5 + $0x48] sm:$0xff]  ;;  %v54_v5 = vld [vmem:[#allocation5 + $0x38] sm:$0xff]  ;;  %s143_s1 = sshll.u32 %s318_s0, 4  ;;  %s145_s29 = sshll.u32 %s367_s3, 4  ;;  %vm123_vm1 = vcmask 392192   ;;  %s144_s1 = int_to_ptr.vmem [resolvable:$true] %s143_s1  ;;  %s146_s29 = int_to_ptr.hbm [resolvable:$true] %s145_s29 }
   0xe   :  { %v52_v4 = vld [vmem:[#allocation5 + $0x28] sm:$0xff]  ;;  %95 = vmatpush.msra.mxu1 %v57_v2  ;;  %75 = vmatpush.msra.mxu0 %v56_v3  ;;  %v53_v6 = vld [vmem:[#allocation5 + $0x30] sm:$0xff]  ;;  %v51_v7 = vld [vmem:[#allocation5 + $0x20] sm:$0xff]  ;;  %s319_s30 = smov [#allocation7]   ;;  %s134_s8 = sshll.u32 %s366_s2, 4  ;;  %s135_s8 = int_to_ptr.hbm [resolvable:$true] %s134_s8 }
   0xf   :  { %116 = vmatpush.msra.mxu2 %v55_v1  ;;  %v50_v8 = vld [vmem:[#allocation5 + $0x18] sm:$0xff]  ;;  %v49_v9 = vld [vmem:[#allocation5 + $0x10] sm:$0xff]  ;;  %v48_v11 = vld [vmem:[#allocation5 + $0x8] sm:$0xff]  ;;  %s132_s5 = sshll.u32 %s319_s30, 4  ;;  %s320_s9 = smov [#allocation10]   ;;  %s133_s5 = int_to_ptr.vmem [resolvable:$true] %s132_s5 }
  0x10   :  { %96 = vmatpush.msra.mxu1 %v54_v5  ;;  %76 = vmatpush.msra.mxu0 %v53_v6  ;;  %v46_v10 = vld [vmem:[#allocation2] sm:$0xff]  ;;  %v47_v12 = vld [vmem:[#allocation5] sm:$0xff]  ;;  %s154_s10 = sshll.u32 %s320_s9, 4  ;;  %s156_s3 = sshll.u32 %s368_s4, 4  ;;  %s155_s10 = int_to_ptr.vmem [resolvable:$true] %s154_s10  ;;  %s157_s3 = int_to_ptr.hbm [resolvable:$true] %s156_s3 }
  0x11   :  { %117 = vmatpush.msra.mxu2 %v52_v4 }
  0x12   :  { %97 = vmatpush.msra.mxu1 %v51_v7  ;;  %77 = vmatpush.msra.mxu0 %v50_v8 }
  0x13   :  { %118 = vmatpush.msra.mxu2 %v49_v9 }
  0x14   :  { %178 = vmatmul.msk.f32.vlgmr.msra.gmra.mxu2 %vm59_vm0, %v46_v10  ;;  %98 = vmatpush.msra.mxu1 %v48_v11 }
  0x15   :  { %78 = vmatpush.msra.mxu0 %v47_v12  ;;  %177 = vmatmul.msk.f32.vlgmr.msra.gmra.mxu1 %vm59_vm0, %v46_v10 }
  0x16   :  { %176 = vmatmul.msk.f32.vlgmr.msra.gmra.mxu0 %vm59_vm0, %v46_v10 }
  0x92   :  { %v100_v13 = vpop.f32.mrf.mxu1 }
  0x93   :  { %125 = vst.msk [vmem:[#allocation8] sm:$0xff] %vm123_vm1, %v100_v13  ;;  %v80_v14 = vpop.f32.mrf.mxu0 }
  0x94   :  { %124 = vst.msk [vmem:[#allocation7] sm:$0xff] %vm123_vm1, %v80_v14  ;;  %148 = dma.vmem_to_hbm [thread:$0]  %s144_s1, 128, %s146_s29, [#allocation9]  }
  0x95   :  { %137 = dma.vmem_to_hbm [thread:$0]  %s133_s5, 128, %s135_s8, [#allocation4]  }
  0x97   :  { %v120_v15 = vpop.f32.mrf.mxu2 }
  0x98   :  { %126 = vst.msk [vmem:[#allocation10] sm:$0xff] %vm123_vm1, %v120_v15 }
  0x99   :  { %159 = dma.vmem_to_hbm [thread:$0]  %s155_s10, 128, %s157_s3, [#allocation9]  }
  0x9a   :  { %310 = dma.done.wait [#allocation4], 128  }
  0x9b   :  { %311 = vsyncadd [#allocation4], 4294967168 }
  0x9c   :  { %312 = dma.done.wait [#allocation9], 256  }
  0x9d   :  { %313 = vsyncadd [#allocation9], 4294967040 }
  0x9e   :  { %172 = vsyncpa [#allocation3], 1 }
  0x9f   :  { %173 = vsyncpa [#allocation6], 1 }
  0xa0   :  { %174 = vsyncpa [#allocation4], 1 }
  0xa1   :  { %175 = vsyncpa [#allocation9], 1 }

</bundles_post_ra>
